<compile_context>
chip_gen: v7x
topology: tpu7x:2x2x1
jax: 0.10.0
libtpu: 0.0.40
codegen_flags: <defaults>
</compile_context>

<pallas_src>
import functools
from math import sqrt

import jax
import jax.numpy as jnp
from jax import lax
from jax.experimental import pallas as pl
from jax.experimental.pallas import tpu as pltpu


def _sigma_kernel(phi_ref, wblk_ref, g_ref, eps_ref, sig_ref, *, c):
    """One grid step: one lane-dense SB tile, all (k, p) pairs at once.

    phi_ref  : VMEM (SB_t, KP*D)   flattened Phi tile (lane-dense, 192 lanes)
    wblk_ref : VMEM (KP*D, KP*D)   block-diagonal S_chol (resident, no re-DMA)
    g_ref    : VMEM (KP, KP*D)     group-indicator matrix (resident)
    eps_ref  : VMEM (KP, 1)        Sigma_eps per (k, p) (resident)
    sig_ref  : VMEM (KP, SB_t)     sigma, transposed -> lane-dense stores
    """
    phi = phi_ref[...]                                                # (SB_t, KPD)
    # tmp[:, k*D:(k+1)*D] = phi_k @ S_chol_k  (one MXU pass instead of KP small ones)
    tmp = jnp.dot(phi, wblk_ref[...], preferred_element_type=jnp.float32)
    # phi @ (S00 + c*I) @ phi^T  =  ||phi @ S_chol||^2 + c * ||phi||^2  (per group)
    y = tmp * tmp + jnp.float32(c) * (phi * phi)                      # (SB_t, KPD)
    # Group sums over each D-wide block, produced directly transposed (KP, SB_t)
    # via a trans_b matmul, so the output store is lane-dense.
    quad_t = lax.dot_general(g_ref[...], y, (((1,), (1,)), ((), ())),
                             preferred_element_type=jnp.float32)      # (KP, SB_t)
    sig_ref[...] = quad_t + eps_ref[...]                              # + Sigma_eps


def _pick_sb_tile(sb, max_tile=2048):
    """Largest legal SB tile.

    - SB <= max_tile: a single tile (grid of 1) — 1 TC chips (v5e/v6e) want the
      biggest tile; the kernel is tiny at these sizes anyway.
    - Otherwise: largest multiple-of-128 divisor of SB up to max_tile (keeps the
      transposed (KP, sb_tile) output block legal and the grid >= 2 for v7x's
      two TensorCores); falls back to a single tile if no such divisor exists.
    """
    if sb <= max_tile:
        return sb
    t = (max_tile // 128) * 128
    while t >= 128:
        if sb % t == 0:
            return t
        t -= 128
    return sb


def bayesian_last_layer_get_prior(phi, s_chol, w_0_0, sigma_eps, alpha,
                                  s_init_diag_add, *, sb_tile=None):
    """Pallas implementation of BayesianLastLayer.get_prior.

    phi       : (S, B, K, P, D) float32
    s_chol    : (K, P, D, D)    float32
    w_0_0     : (K, P, D, 1)    float32
    sigma_eps : (P,)            float32

    Returns (loc, cov, sigma):
      loc   : (K, P, D)     (broadcast over (S, B) left implicit)
      cov   : (K, P, D, D)  = S_1_0 (broadcast over (S, B) left implicit)
      sigma : (S, B, K, P)  predictive variance; torch's diag_embed is simply
                            sigma[..., None] * eye(P) and is left to the consumer.
    """
    S_, B_, K_, P_, D_ = phi.shape
    KP = K_ * P_
    KPD = KP * D_
    SB = S_ * B_
    c = float(s_init_diag_add) + float(alpha)

    # --- free reshapes / tiny one-time XLA prep (parameter-sized, ~150 KB) ---
    phi_r = phi.reshape(SB, KPD).astype(jnp.float32)          # lane-dense, no transpose
    schol_r = s_chol.reshape(KP, D_, D_).astype(jnp.float32)

    eye_kp = jnp.eye(KP, dtype=jnp.float32)
    # Block-diagonal weight: W[k*D+i, l*D+j] = S_chol[k,i,j] * (k == l)
    w_blk = (schol_r[:, :, None, :] * eye_kp[:, None, :, None]).reshape(KPD, KPD)
    # Group indicator: G[k, k*D + j] = 1
    g = jnp.repeat(eye_kp, D_, axis=1)                        # (KP, KPD)
    # Sigma_eps per (k, p): kp = k*P + p -> sigma_eps[kp % P]
    sigeps_kp = jnp.tile(sigma_eps.astype(jnp.float32), K_).reshape(KP, 1)

    if sb_tile is None:
        sb_tile = _pick_sb_tile(SB)
    assert SB % sb_tile == 0
    assert sb_tile == SB or sb_tile % 128 == 0
    num_tiles = SB // sb_tile

    kernel = functools.partial(_sigma_kernel, c=c)

    sig_t = pl.pallas_call(
        kernel,
        out_shape=jax.ShapeDtypeStruct((KP, SB), jnp.float32),
        grid_spec=pltpu.PrefetchScalarGridSpec(
            num_scalar_prefetch=0,
            grid=(num_tiles,),
            in_specs=[
                pl.BlockSpec((sb_tile, KPD), lambda i: (i, 0)),   # phi tile
                pl.BlockSpec((KPD, KPD), lambda i: (0, 0)),       # resident W_blk
                pl.BlockSpec((KP, KPD), lambda i: (0, 0)),        # resident G
                pl.BlockSpec((KP, 1), lambda i: (0, 0)),          # resident Sigma_eps
            ],
            out_specs=pl.BlockSpec((KP, sb_tile), lambda i: (0, i)),
        ),
        compiler_params=pltpu.CompilerParams(
            dimension_semantics=("parallel",)),
    )(phi_r, w_blk, g, sigeps_kp)

    # Covariance hoisted out of the tiled grid: only KP*D*D = 24 KB of work.
    cov = (jnp.einsum('kij,klj->kil', schol_r, schol_r)
           + c * jnp.eye(D_, dtype=jnp.float32)).reshape(K_, P_, D_, D_)
    loc = w_0_0[..., 0]                                        # (K, P, D)

    sigma = sig_t.T.reshape(S_, B_, K_, P_)                    # tiny transpose in XLA
    return loc, cov, sigma


def _reference_get_prior(phi, s_chol, w_0_0, sigma_eps, alpha, diag_add):
    """Pure-JAX reference mirroring the torch code (fully broadcast)."""
    S_, B_, K_, P_, D_ = phi.shape
    eye = jnp.eye(D_, dtype=jnp.float32)
    s00 = s_chol @ jnp.swapaxes(s_chol, -1, -2) + diag_add * eye        # (K,P,D,D)
    s10 = s00 + alpha * eye
    phi_u = phi[..., None, :]                                           # (S,B,K,P,1,D)
    sigma = (phi_u @ s10 @ jnp.swapaxes(phi_u, -1, -2))[..., 0, 0]      # (S,B,K,P)
    sigma = sigma + sigma_eps[None, None, None, :]
    loc = jnp.broadcast_to(w_0_0[..., 0], (S_, B_, K_, P_, D_))
    cov = jnp.broadcast_to(s10, (S_, B_, K_, P_, D_, D_))
    return loc, cov, sigma[..., None] * jnp.eye(P_, dtype=jnp.float32)


if __name__ == "__main__":
    # Small, module-consistent shapes.  SB = S*B = 16, KP = 6, D = 32.
    S_, B_ = 2, 8          # num samples, batch size
    K_ = 3                 # num_GMM_components
    P_ = 2                 # pred_state_length
    D_ = 32                # phi_dim

    sigma_eps_init = 0.1
    alpha_init = 1.0
    s_init_diag_add = 1e-3

    key = jax.random.PRNGKey(0)
    k_phi, k_w, k_schol = jax.random.split(key, 3)

    # Deterministic parameter init (matches the torch __init__ shapes / glorot ranges).
    glorot_w = sqrt(6.0 / (D_ + 1))
    w_0_0 = glorot_w * (jax.random.uniform(k_w, (K_, P_, D_, 1), jnp.float32) * 2 - 1)
    glorot_s = sqrt(3.0 / D_)
    s_chol = glorot_s * (jax.random.uniform(k_schol, (K_, P_, D_, D_), jnp.float32) * 2 - 1)
    sigma_eps = jnp.full((P_,), sigma_eps_init, dtype=jnp.float32)

    phi = jax.random.normal(k_phi, (S_, B_, K_, P_, D_), jnp.float32)

    # TODO(synk): incorporate_transition / incorporate_batch use torch.linalg.solve
    # and scatter_ for the stateful Kalman update; only the get_prior path is a
    # Pallas kernel here.
    loc, cov, sigma = bayesian_last_layer_get_prior(
        phi, s_chol, w_0_0, sigma_eps, alpha_init, s_init_diag_add)
    jax.block_until_ready((loc, cov, sigma))

    loc_r, cov_r, sig_r = _reference_get_prior(
        phi, s_chol, w_0_0, sigma_eps, alpha_init, s_init_diag_add)

    assert loc.shape == (K_, P_, D_)
    assert cov.shape == (K_, P_, D_, D_)
    assert sigma.shape == (S_, B_, K_, P_)

    # Broadcast / diag-embed the compact outputs only for verification against the
    # torch-style reference (the wrapper intentionally does not materialize these).
    loc_b = jnp.broadcast_to(loc, (S_, B_, K_, P_, D_))
    cov_b = jnp.broadcast_to(cov, (S_, B_, K_, P_, D_, D_))
    sig_diag = sigma[..., None] * jnp.eye(P_, dtype=sigma.dtype)   # torch.diag_embed

    assert jnp.allclose(loc_b, loc_r, atol=1e-5)
    assert jnp.allclose(cov_b, cov_r, atol=1e-4)
    assert jnp.allclose(sig_diag, sig_r, rtol=1e-5, atol=1e-4)

    print("KERNEL_OK")
</pallas_src>

<mosaic_0001>
module attributes {stable_mosaic.version = 11 : i64} {
  func.func @_sigma_kernel(%arg0: i32, %arg1: memref<16x192xf32, #tpu.memory_space<vmem>>, %arg2: memref<192x192xf32, #tpu.memory_space<vmem>>, %arg3: memref<6x192xf32, #tpu.memory_space<vmem>>, %arg4: memref<6x1xf32, #tpu.memory_space<vmem>>, %arg5: memref<6x16xf32, #tpu.memory_space<vmem>>) attributes {dimension_semantics = [#tpu.dimension_semantics<parallel>], iteration_bounds = array<i64: 1>, scalar_prefetch = 0 : i64, scratch_operands = 0 : i64, tpu.core_type = #tpu.core_type<tc>, window_params = [{transform_indices = @transform_0, window_bounds = array<i64: 16, 192>}, {pipeline_mode = #tpu.pipeline_mode<synchronous>, transform_indices = @transform_1, window_bounds = array<i64: 192, 192>}, {pipeline_mode = #tpu.pipeline_mode<synchronous>, transform_indices = @transform_2, window_bounds = array<i64: 6, 192>}, {pipeline_mode = #tpu.pipeline_mode<synchronous>, transform_indices = @transform_3, window_bounds = array<i64: 6, 1>}, {transform_indices = @transform_4, window_bounds = array<i64: 6, 16>}]} {
    %c0 = arith.constant 0 : index
    %c0_0 = arith.constant 0 : index
    %0 = vector.load %arg1[%c0, %c0_0] : memref<16x192xf32, #tpu.memory_space<vmem>>, vector<16x192xf32>
    %c0_1 = arith.constant 0 : index
    %c0_2 = arith.constant 0 : index
    %1 = vector.load %arg2[%c0_1, %c0_2] : memref<192x192xf32, #tpu.memory_space<vmem>>, vector<192x192xf32>
    %cst = arith.constant dense<0.000000e+00> : vector<16x192xf32>
    %2 = tpu.matmul %0, %1, %cst {dimension_numbers = #tpu.dot_dimension_numbers<[1], [0], [0], [1], [0, 0, 1, 1], [], []>} : vector<16x192xf32>, vector<192x192xf32>, vector<16x192xf32> -> vector<16x192xf32>
    %3 = arith.mulf %2, %2 : vector<16x192xf32>
    %4 = arith.mulf %0, %0 : vector<16x192xf32>
    %cst_3 = arith.constant 1.001000e+00 : f32
    %5 = vector.broadcast %cst_3 : f32 to vector<16x192xf32>
    %6 = arith.mulf %5, %4 : vector<16x192xf32>
    %7 = arith.addf %3, %6 : vector<16x192xf32>
    %c0_4 = arith.constant 0 : index
    %c0_5 = arith.constant 0 : index
    %8 = vector.load %arg3[%c0_4, %c0_5] : memref<6x192xf32, #tpu.memory_space<vmem>>, vector<6x192xf32>
    %cst_6 = arith.constant dense<0.000000e+00> : vector<6x16xf32>
    %9 = tpu.matmul %8, %7, %cst_6 {dimension_numbers = #tpu.dot_dimension_numbers<[1], [1], [0], [0], [0, 0, 1, 0], [], []>} : vector<6x192xf32>, vector<16x192xf32>, vector<6x16xf32> -> vector<6x16xf32>
    %c0_7 = arith.constant 0 : index
    %c0_8 = arith.constant 0 : index
    %10 = vector.load %arg4[%c0_7, %c0_8] : memref<6x1xf32, #tpu.memory_space<vmem>>, vector<6x1xf32>
    %11 = vector.broadcast %10 : vector<6x1xf32> to vector<6x16xf32>
    %12 = arith.addf %9, %11 : vector<6x16xf32>
    %c0_9 = arith.constant 0 : index
    %c0_10 = arith.constant 0 : index
    %13 = vector.load %arg5[%c0_9, %c0_10] : memref<6x16xf32, #tpu.memory_space<vmem>>, vector<6x16xf32>
    tpu.vector_store %arg5[%c0_9, %c0_10], %12 {strides = array<i32>} : memref<6x16xf32, #tpu.memory_space<vmem>>, vector<6x16xf32>,
    return
  }
  func.func @transform_0(%arg0: i32) -> (i32, i32) {
    %c0_i32 = arith.constant 0 : i32
    %c0_i32_0 = arith.constant 0 : i32
    return %arg0, %c0_i32 : i32, i32
  }
  func.func @transform_1(%arg0: i32) -> (i32, i32) {
    %c0_i32 = arith.constant 0 : i32
    %c0_i32_0 = arith.constant 0 : i32
    %c0_i32_1 = arith.constant 0 : i32
    return %c0_i32, %c0_i32_0 : i32, i32
  }
  func.func @transform_2(%arg0: i32) -> (i32, i32) {
    %c0_i32 = arith.constant 0 : i32
    %c0_i32_0 = arith.constant 0 : i32
    %c0_i32_1 = arith.constant 0 : i32
    return %c0_i32, %c0_i32_0 : i32, i32
  }
  func.func @transform_3(%arg0: i32) -> (i32, i32) {
    %c0_i32 = arith.constant 0 : i32
    %c0_i32_0 = arith.constant 0 : i32
    %c0_i32_1 = arith.constant 0 : i32
    return %c0_i32, %c0_i32_0 : i32, i32
  }
  func.func @transform_4(%arg0: i32) -> (i32, i32) {
    %c0_i32 = arith.constant 0 : i32
    %c0_i32_0 = arith.constant 0 : i32
    return %c0_i32, %arg0 : i32, i32
  }
}

</mosaic_0001>

<bundles_post_ra>
// kernel: tpu_custom_call.1
= control target key start
LH: loop header
LB: loop body
LE: loop exit
PB: predicated region body
PF: predicated region fallthrough
CT: control target
= control target key end

     0   :  { %9 = vsyncpa [#allocation3], 0  ;;  %s526_s0 = inlined_call_operand.hbm [shape: f32[16,192], index: 0, kind: input, shape index: {}]   ;;  %s527_s1 = inlined_call_operand.hbm [shape: f32[192,192], index: 1, kind: input, shape index: {}]   ;;  %s528_s2 = inlined_call_operand.vmem [shape: f32[6,192], index: 2, kind: input, shape index: {}]   ;;  %s529_s3 = inlined_call_operand.vmem [shape: f32[6,1], index: 3, kind: input, shape index: {}]   ;;  %s530_s4 = inlined_call_operand.hbm [shape: f32[6,16], index: 4, kind: output, shape index: {}]  }
   0x1   :  { %10 = vsyncpa [#allocation6], 0 }
   0x2   :  { %11 = vsyncpa [#allocation4], 0  ;;  %s440_s15 = smov [#allocation2]   ;;  %s368_s19 = scalar_lea.hbm %s526_s0, 512 }
   0x3   :  { %s17_s16 = sshll.u32 %s440_s15, 4  ;;  %p369_p0 = scmp.ne.s32.totalorder %s526_s0, %s368_s19  ;;  %s18_s16 = int_to_ptr.vmem [resolvable:$true] %s17_s16 }
   0x4   :  { %p372_p1 = scmp.lt.u32.totalorder %s368_s19, %s526_s0 }
   0x6   :  { %p374_p2 = pnand %p372_p1, %p369_p0 }
   0x8   :  { %377 = shalt.err (!%p374_p2)
}
   0x9   :  { %s378_s24 = scalar_lea.vmem %s18_s16, 512  ;;  %p383_p4 = scmp.lt.s32.totalorder %s18_s16, %s18_s16 }
   0xa   :  { %p379_p3 = scmp.ne.s32.totalorder %s18_s16, %s378_s24  ;;  %p384_p5 = scmp.lt.s32.totalorder %s378_s24, %s378_s24 }
   0xc   :  { %p385_p6 = por %p384_p5, %p383_p4 }
   0xe   :  { %p386_p7 = pnand %p385_p6, %p379_p3 }
  0x10   :  { %389 = shalt.err (!%p386_p7)
}
  0x11   :  { %s441_s25 = smov 256   ;;  %s442_s26 = smov 16  }
  0x12   :  { %23 = dma.hbm_to_vmem [thread:$0]  %s526_s0, 512, %s18_s16, [#allocation3], %s441_s25, %s441_s25, %s442_s26  }
  0x13   :  { %s443_s29 = smov [#allocation5]   ;;  %s390_s7 = scalar_lea.hbm %s527_s1, 6144 }
  0x14   :  { %s29_s30 = sshll.u32 %s443_s29, 4  ;;  %p391_p8 = scmp.ne.s32.totalorder %s527_s1, %s390_s7  ;;  %s30_s30 = int_to_ptr.vmem [resolvable:$true] %s29_s30 }
  0x15   :  { %p394_p9 = scmp.lt.u32.totalorder %s390_s7, %s527_s1 }
  0x17   :  { %p396_p10 = pnand %p394_p9, %p391_p8 }
  0x19   :  { %399 = shalt.err (!%p396_p10)
}
  0x1a   :  { %s400_s12 = scalar_lea.vmem %s30_s30, 6144  ;;  %p405_p12 = scmp.lt.s32.totalorder %s30_s30, %s30_s30 }
  0x1b   :  { %p401_p11 = scmp.ne.s32.totalorder %s30_s30, %s400_s12  ;;  %p406_p13 = scmp.lt.s32.totalorder %s400_s12, %s400_s12 }
  0x1d   :  { %p407_p0 = por %p406_p13, %p405_p12 }
  0x1f   :  { %p408_p1 = pnand %p407_p0, %p401_p11 }
  0x21   :  { %411 = shalt.err (!%p408_p1)
}
  0x22   :  { %35 = dma.hbm_to_vmem [thread:$0]  %s527_s1, 6144, %s30_s30, [#allocation6], %s441_s25, %s441_s25, %s442_s26  }
  0x23   :  { %434 = dma.done.wait [#allocation3], 512  }
  0x24   :  { %435 = vsyncadd [#allocation3], 4294966784 }
  0x25   :  { %436 = dma.done.wait [#allocation6], 6144  }
  0x26   :  { %437 = vsyncadd [#allocation6], 4294961152  ;;  %v51_v0 = vld [vmem:[#allocation5 + $0x8] sm:$0xff]  ;;  %v53_v1 = vld [vmem:[#allocation5 + $0x18] sm:$0xff]  ;;  %vm98_vm0 = vcmask 523264   ;;  %s445_s18 = smov [#allocation7]  }
  0x27   :  { %v50_v2 = vld [vmem:[#allocation5] sm:$0xff]  ;;  %v308_v3 = vpack.c.bf16 %v53_v1, %v51_v0  ;;  %v52_v4 = vld [vmem:[#allocation5 + $0x10] sm:$0xff]  ;;  %v55_v5 = vld [vmem:[#allocation5 + $0x28] sm:$0xff]  ;;  %s293_s19 = sshll.u32 %s445_s18, 4  ;;  %vm285_vm2 = vcmask 128000   ;;  %s294_s19 = int_to_ptr.vmem [resolvable:$true] %s293_s19 }
  0x28   :  { %v57_v6 = vld [vmem:[#allocation5 + $0x38] sm:$0xff]  ;;  %v310_v7 = vpack.c.bf16 %v52_v4, %v50_v2  ;;  %v54_v9 = vld [vmem:[#allocation5 + $0x20] sm:$0xff]  ;;  %v56_v10 = vld [vmem:[#allocation5 + $0x30] sm:$0xff]  ;;  %s412_s20 = scalar_lea.vmem %s294_s19, 128  ;;  %p417_p3 = scmp.lt.s32.totalorder %s294_s19, %s294_s19 }
  0x29   :  { %v312_v8 = vpack.c.bf16 %v57_v6, %v55_v5  ;;  %v59_v11 = vld [vmem:[#allocation5 + $0x48] sm:$0xff]  ;;  %309 = vmatprep.subr.bf16.mxu0 %v308_v3  ;;  %v61_v12 = vld [vmem:[#allocation5 + $0x58] sm:$0xff]  ;;  %v314_v13 = vpack.c.bf16 %v56_v10, %v54_v9  ;;  %v58_v15 = vld [vmem:[#allocation5 + $0x40] sm:$0xff]  ;;  %p413_p2 = scmp.ne.s32.totalorder %s294_s19, %s412_s20  ;;  %p418_p4 = scmp.lt.s32.totalorder %s412_s20, %s412_s20 }
  0x2a   :  { %311 = vmatpush1.bf16.msra.mxu0 %v310_v7  ;;  %v316_v14 = vpack.c.bf16 %v61_v12, %v59_v11  ;;  %v60_v16 = vld [vmem:[#allocation5 + $0x50] sm:$0xff]  ;;  %v63_v17 = vld [vmem:[#allocation5 + $0x68] sm:$0xff]  ;;  %v65_v18 = vld [vmem:[#allocation5 + $0x78] sm:$0xff] }
  0x2b   :  { %313 = vmatprep.subr.bf16.mxu0 %v312_v8  ;;  %v318_v19 = vpack.c.bf16 %v60_v16, %v58_v15  ;;  %v320_v20 = vpack.c.bf16 %v65_v18, %v63_v17  ;;  %v62_v21 = vld [vmem:[#allocation5 + $0x60] sm:$0xff]  ;;  %v64_v22 = vld [vmem:[#allocation5 + $0x70] sm:$0xff]  ;;  %v67_v23 = vld [vmem:[#allocation5 + $0x88] sm:$0xff]  ;;  %p419_p5 = por %p418_p4, %p417_p3 }
  0x2c   :  { %v69_v24 = vld [vmem:[#allocation5 + $0x98] sm:$0xff]  ;;  %v322_v25 = vpack.c.bf16 %v64_v22, %v62_v21  ;;  %v66_v27 = vld [vmem:[#allocation5 + $0x80] sm:$0xff]  ;;  %v68_v28 = vld [vmem:[#allocation5 + $0x90] sm:$0xff] }
  0x2d   :  { %v324_v26 = vpack.c.bf16 %v69_v24, %v67_v23  ;;  %v71_v29 = vld [vmem:[#allocation5 + $0xa8] sm:$0xff]  ;;  %v73_v30 = vld [vmem:[#allocation5 + $0xb8] sm:$0xff]  ;;  %v326_v31 = vpack.c.bf16 %v68_v28, %v66_v27  ;;  %v70_v34 = vld [vmem:[#allocation5 + $0xa0] sm:$0xff]  ;;  %p420_p6 = pnand %p419_p5, %p413_p2 }
  0x2e   :  { %315 = vmatpush1.bf16.msra.mxu0 %v314_v13  ;;  %v495_v32 = vld [vmem:[#allocation2 + $0x8] sm:$0xff]  ;;  %v328_v33 = vpack.c.bf16 %v73_v30, %v71_v29  ;;  %v72_v35 = vld [vmem:[#allocation5 + $0xb0] sm:$0xff]  ;;  %v77_v37 = vld [vmem:[#allocation5 + $0xd8] sm:$0xff] }
  0x2f   :  { %317 = vmatprep.subr.bf16.mxu0 %v316_v14  ;;  %303 = vmatprep.mubr.msk.f32.mxu0 %vm98_vm0, %v495_v32  ;;  %v75_v36 = vld [vmem:[#allocation5 + $0xc8] sm:$0xff]  ;;  %v330_v38 = vpack.c.bf16 %v72_v35, %v70_v34  ;;  %v74_v40 = vld [vmem:[#allocation5 + $0xc0] sm:$0xff]  ;;  %v76_v41 = vld [vmem:[#allocation5 + $0xd0] sm:$0xff]  ;;  %v444_v14 = vmov 0   ;;  %v187_v16 = vmul.f32 %v495_v32, %v495_v32 }
  0x30   :  { %v332_v39 = vpack.c.bf16 %v77_v37, %v75_v36  ;;  %v79_v42 = vld [vmem:[#allocation5 + $0xe8] sm:$0xff]  ;;  %v81_v43 = vld [vmem:[#allocation5 + $0xf8] sm:$0xff]  ;;  %v334_v44 = vpack.c.bf16 %v76_v41, %v74_v40  ;;  %v78_v46 = vld [vmem:[#allocation5 + $0xe0] sm:$0xff]  ;;  %367 = vset.pattern.permute.xlu0 %v444_v14 }
  0x31   :  { %v336_v45 = vpack.c.bf16 %v81_v43, %v79_v42  ;;  %v80_v47 = vld [vmem:[#allocation5 + $0xf0] sm:$0xff]  ;;  %v83_v48 = vld [vmem:[#allocation5 + $0x108] sm:$0xff]  ;;  %v85_v49 = vld [vmem:[#allocation5 + $0x118] sm:$0xff] }
  0x32   :  { %319 = vmatpush1.bf16.msra.mxu0 %v318_v19  ;;  %v338_v50 = vpack.c.bf16 %v80_v47, %v78_v46  ;;  %v340_v51 = vpack.c.bf16 %v85_v49, %v83_v48  ;;  %v82_v52 = vld [vmem:[#allocation5 + $0x100] sm:$0xff]  ;;  %v84_v53 = vld [vmem:[#allocation5 + $0x110] sm:$0xff]  ;;  %v87_v54 = vld [vmem:[#allocation5 + $0x128] sm:$0xff]  ;;  %v191_v19 = vmul.f32 1.001, %v187_v16 }
  0x33   :  { %321 = vmatprep.subr.bf16.mxu0 %v320_v20  ;;  %v89_v55 = vld [vmem:[#allocation5 + $0x138] sm:$0xff]  ;;  %v342_v56 = vpack.c.bf16 %v84_v53, %v82_v52  ;;  %v86_v58 = vld [vmem:[#allocation5 + $0x120] sm:$0xff]  ;;  %v88_v59 = vld [vmem:[#allocation5 + $0x130] sm:$0xff] }
  0x34   :  { %v344_v57 = vpack.c.bf16 %v89_v55, %v87_v54  ;;  %v91_v60 = vld [vmem:[#allocation5 + $0x148] sm:$0xff]  ;;  %v93_v61 = vld [vmem:[#allocation5 + $0x158] sm:$0xff]  ;;  %v346_v62 = vpack.c.bf16 %v88_v59, %v86_v58  ;;  %v90_v0 = vld [vmem:[#allocation5 + $0x140] sm:$0xff] }
  0x35   :  { %v348_v63 = vpack.c.bf16 %v93_v61, %v91_v60  ;;  %v92_v1 = vld [vmem:[#allocation5 + $0x150] sm:$0xff]  ;;  %v95_v2 = vld [vmem:[#allocation5 + $0x168] sm:$0xff]  ;;  %v97_v3 = vld [vmem:[#allocation5 + $0x178] sm:$0xff] }
  0x36   :  { %323 = vmatpush1.bf16.msra.mxu0 %v322_v25  ;;  %v350_v4 = vpack.c.bf16 %v92_v1, %v90_v0  ;;  %v352_v5 = vpack.c.bf16 %v97_v3, %v95_v2  ;;  %v94_v6 = vld [vmem:[#allocation5 + $0x160] sm:$0xff]  ;;  %v96_v7 = vld [vmem:[#allocation5 + $0x170] sm:$0xff]  ;;  %v49_v10 = vld [vmem:[#allocation2 + $0x18] sm:$0xff] }
  0x37   :  { %325 = vmatprep.subr.bf16.mxu0 %v324_v26  ;;  %v354_v8 = vpack.c.bf16 %v96_v7, %v94_v6  ;;  %v46_v9 = vld [vmem:[#allocation2] sm:$0xff]  ;;  %v48_v11 = vld [vmem:[#allocation2 + $0x10] sm:$0xff]  ;;  %v199_v12 = vld [vmem:[%s528_s2 + $0x8] sm:$0x3f]  ;;  %v189_v21 = vmul.f32 %v49_v10, %v49_v10 }
  0x38   :  { %307 = vmatprep.mubr.msk.f32.mxu1 %vm98_vm0, %v199_v12  ;;  %v200_v13 = vld [vmem:[%s529_s3] sm:$0x3f]  ;;  %v186_v15 = vmul.f32 %v46_v9, %v46_v9  ;;  %v188_v18 = vmul.f32 %v48_v11, %v48_v11  ;;  %vm357_vm1 = vmpackc.low %vm98_vm0, %vm98_vm0 }
  0x39   :  { %203 = vperm.xlu0 %367, %v200_v13   ;;  %v193_v29 = vmul.f32 1.001, %v189_v21  ;;  %v198_v37 = vld [vmem:[%s528_s2] sm:$0x3f] }
  0x3a   :  { %327 = vmatpush1.bf16.msra.mxu0 %v326_v31  ;;  %v190_v17 = vmul.f32 1.001, %v186_v15  ;;  %v192_v25 = vmul.f32 1.001, %v188_v18 }
  0x3b   :  { %329 = vmatprep.subr.bf16.mxu0 %v328_v33 }
  0x3e   :  { %331 = vmatpush1.bf16.msra.mxu0 %v330_v38 }
  0x3f   :  { %333 = vmatprep.subr.bf16.mxu0 %v332_v39 }
  0x42   :  { %335 = vmatpush1.bf16.msra.mxu0 %v334_v44 }
  0x43   :  { %337 = vmatprep.subr.bf16.mxu0 %v336_v45 }
  0x46   :  { %339 = vmatpush1.bf16.msra.mxu0 %v338_v50 }
  0x47   :  { %341 = vmatprep.subr.bf16.mxu0 %v340_v51 }
  0x4a   :  { %343 = vmatpush1.bf16.msra.mxu0 %v342_v56 }
  0x4b   :  { %345 = vmatprep.subr.bf16.mxu0 %v344_v57 }
  0x4e   :  { %347 = vmatpush1.bf16.msra.mxu0 %v346_v62 }
  0x4f   :  { %349 = vmatprep.subr.bf16.mxu0 %v348_v63 }
  0x52   :  { %351 = vmatpush1.bf16.msra.mxu0 %v350_v4 }
  0x53   :  { %353 = vmatprep.subr.bf16.mxu0 %v352_v5 }
  0x56   :  { %355 = vmatpush1.bf16.msra.mxu0 %v354_v8 }
  0x59   :  { %170 = vmatmul.mubr.f32.vlgmr.msra.gmra.mrb[0].mxu0 %v46_v9 }
  0x5a   :  { %304 = vmatprep.mubr.msk.f32.mxu0 %vm98_vm0, %v49_v10 }
  0x5d   :  { %176 = vmatmul.mubr.f32.gmra.mrb[2].mxu0 %v48_v11 }
  0xb8   :  { %v204_v38 = vpop.permute.xlu0 %203 }
 0x12c   :  { %v171_v20 = vpop.f32.mrb[0].mxu0 }
 0x12d   :  { %v182_v22 = vmul.f32 %v171_v20, %v171_v20  ;;  %v173_v23 = vpop.f32.mrb[1].mxu0 }
 0x12e   :  { %v183_v24 = vmul.f32 %v173_v23, %v173_v23 }
 0x12f   :  { %v194_v26 = vadd.f32 %v190_v17, %v182_v22 }
 0x130   :  { %v195_v27 = vadd.f32 %v191_v19, %v183_v24  ;;  %v177_v28 = vpop.f32.mrb[2].mxu0 }
 0x131   :  { %v184_v30 = vmul.f32 %v177_v28, %v177_v28  ;;  %v179_v31 = vpop.f32.mrb[3].mxu0 }
 0x132   :  { %v185_v33 = vmul.f32 %v179_v31, %v179_v31 }
 0x133   :  { %v196_v34 = vadd.f32 %v192_v25, %v184_v30 }
 0x134   :  { %v197_v35 = vadd.f32 %v193_v29, %v185_v33 }
 0x135   :  { %v359_v32 = vpack.c.bf16 %v196_v34, %v194_v26 }
 0x136   :  { %v356_v36 = vpack.c.bf16 %v197_v35, %v195_v27 }
 0x138   :  { %358 = vmatprep.subr.msk.bf16.mxu1 %vm357_vm1, %v356_v36 }
 0x139   :  { %360 = vmatpush1.bf16.xpose.msra.mxu1 %v359_v32 }
 0x140   :  { %280 = vmatmul.mubr.f32.vlgmr.msra.gmra.mrb[0].mxu1 %v198_v37 }
 0x213   :  { %v281_v39 = vpop.f32.mrb[0].mxu1 }
 0x214   :  { %v282_v40 = vadd.f32 %v281_v39, %v204_v38  ;;  %v283_v41 = vpop.f32.mrb[1].mxu1 }
 0x216   :  { %286 = vst.msk [vmem:[#allocation7] sm:$0x3f] %vm285_vm2, %v282_v40 }
 0x217   :  { %423 = shalt.err (!%p420_p6)
}
 0x218   :  { %s424_s2 = scalar_lea.hbm %s530_s4, 128 }
 0x219   :  { %p425_p7 = scmp.ne.s32.totalorder %s530_s4, %s424_s2  ;;  %p428_p8 = scmp.lt.u32.totalorder %s424_s2, %s530_s4 }
 0x21b   :  { %p430_p9 = pnand %p428_p8, %p425_p7 }
 0x21d   :  { %433 = shalt.err (!%p430_p9)
}
 0x21e   :  { %296 = dma.vmem_to_hbm [thread:$0]  %s294_s19, 128, %s530_s4, [#allocation4]  }
 0x21f   :  { %438 = dma.done.wait [#allocation4], 128  }
 0x220   :  { %439 = vsyncadd [#allocation4], 4294967168 }
 0x221   :  { %300 = vsyncpa [#allocation3], 1 }
 0x222   :  { %301 = vsyncpa [#allocation6], 1 }
 0x223   :  { %302 = vsyncpa [#allocation4], 1 }

</bundles_post_ra>
